<compile_context>
chip_gen: v7x
topology: tpu7x:2x2x1
jax: 0.10.0
libtpu: 0.0.40
codegen_flags: <defaults>
</compile_context>

<pallas_src>
import functools

import jax
import jax.numpy as jnp
from jax.experimental import pallas as pl
from jax.experimental.pallas import tpu as pltpu


def _round_up(v, m):
    return (v + m - 1) // m * m


def _choose_tile(n, candidates):
    """Pick the tile that minimizes zero padding; tie-break toward the larger
    tile (fewer grid steps / longer, more efficient DMAs)."""
    best_t, best_pad = None, None
    for t in candidates:
        pad = _round_up(n, t)
        if best_pad is None or pad < best_pad or (pad == best_pad and t > best_t):
            best_t, best_pad = t, pad
    return best_t, best_pad


def _gcn_prelu_kernel(adj_ref, xw_ref, b_ref, alpha_ref, o_ref, acc_ref, *, tk):
    """One (row-tile i, reduction-tile k) step of  PReLU(A_hat @ XW + b).

    adj_ref   : (TM, TK)          bf16  streamed adjacency block
    xw_ref    : (N_pad_k, H_pad)  bf16  VMEM-resident precomputed x @ W
    b_ref     : (1, H_pad)        f32   bias
    alpha_ref : (1, H_pad)        f32   PReLU slope
    o_ref     : (TM, H_pad)       f32   output row tile
    acc_ref   : (TM, H_pad)       f32   accumulator scratch
    """
    k = pl.program_id(1)

    @pl.when(k == 0)
    def _():
        acc_ref[...] = jnp.zeros_like(acc_ref)

    start = pl.multiple_of(k * tk, tk)
    xw_blk = xw_ref[pl.ds(start, tk), :]            # slice of the resident slab
    acc_ref[...] += jnp.dot(adj_ref[...], xw_blk,
                            preferred_element_type=jnp.float32)

    @pl.when(k == pl.num_programs(1) - 1)
    def _():
        h = acc_ref[...] + b_ref[...]
        o_ref[...] = jnp.where(h > 0, h, alpha_ref[...] * h).astype(o_ref.dtype)


def _build_padded_adjacency(edge_index, num_nodes, pad_rows, pad_cols, dtype):
    """GCN-normalized A_hat = D^-1/2 (A+I) D^-1/2 built directly into a
    zero-padded (pad_rows, pad_cols) buffer, normalized and cast to `dtype`
    in one fused pass (padded rows/cols stay exactly zero)."""
    src, dst = edge_index[0], edge_index[1]
    A = jnp.zeros((pad_rows, pad_cols), jnp.float32)
    A = A.at[src, dst].set(1.0)
    A = A.at[dst, src].set(1.0)                                   # undirected
    idx = jnp.arange(num_nodes)
    A = A.at[idx, idx].set(1.0)                                   # self loops
    deg = A.sum(axis=1)                                           # padded rows -> 0
    d_row = jnp.where(deg > 0, 1.0 / jnp.sqrt(deg), 0.0)
    d_col = jnp.zeros((pad_cols,), jnp.float32).at[:num_nodes].set(
        d_row[:num_nodes])
    return (d_row[:, None] * A * d_col[None, :]).astype(dtype)


def _sugbcon_forward_impl(x, edge_index, w, b, alpha):
    """Pallas implementation of SugbCon.forward (GCNConv + PReLU encoder)."""
    N, f_in = x.shape
    h_dim = w.shape[1]
    h_pad = _round_up(h_dim, 128)                 # lane-dense output stores

    # Row tile (sublane dim, multiple of 8).  For N > 128, prefer the tile
    # with least padding; 128/256 keep >=2 row tiles so v7x's two TensorCores
    # both get work on the "parallel" axis.
    if N <= 128:
        tm = _round_up(N, 8)
        n_pad_m = tm
    else:
        tm, n_pad_m = _choose_tile(N, (512, 256, 128))
    # Reduction tile (lane dim of the adjacency block, multiple of 128).
    tk, n_pad_k = _choose_tile(N, (2048, 1024, 512, 256, 128))

    cdt = jnp.bfloat16

    # Adjacency: padded + bf16 in one pass (this is the dominant HBM stream).
    adj_p = _build_padded_adjacency(edge_index, N, n_pad_m, n_pad_k, cdt)

    # XW = x @ W precomputed ONCE (bf16 inputs, f32 accumulate), then kept
    # VMEM-resident inside the kernel.
    xw = jnp.dot(x.astype(cdt), w.astype(cdt),
                 preferred_element_type=jnp.float32).astype(cdt)
    xw_p = jnp.zeros((n_pad_k, h_pad), cdt).at[:N, :h_dim].set(xw)

    b_p = jnp.zeros((1, h_pad), jnp.float32).at[:, :h_dim].set(
        b.astype(jnp.float32).reshape(1, h_dim))
    a_p = jnp.zeros((1, h_pad), jnp.float32).at[:, :h_dim].set(
        alpha.astype(jnp.float32).reshape(1, h_dim))

    grid = (n_pad_m // tm, n_pad_k // tk)         # (row tiles, reduction tiles)

    # VMEM budget: adj double-buffer + resident XW + out double-buffer + acc
    # (+ bias/alpha).  Leave 2x headroom, cap at 64 MiB (v7x physical VMEM).
    vmem_need = (2 * tm * tk * 2
                 + 2 * n_pad_k * h_pad * 2
                 + 2 * tm * h_pad * 4
                 + tm * h_pad * 4
                 + 4 * h_pad * 4)
    vmem_limit = int(min(max(2 * vmem_need, 16 << 20), 64 << 20))

    kernel = functools.partial(_gcn_prelu_kernel, tk=tk)

    out = pl.pallas_call(
        kernel,
        out_shape=jax.ShapeDtypeStruct((n_pad_m, h_pad), jnp.float32),
        grid_spec=pltpu.PrefetchScalarGridSpec(
            num_scalar_prefetch=0,
            grid=grid,
            in_specs=[
                pl.BlockSpec((tm, tk), lambda i, k: (i, k)),           # A_hat
                pl.BlockSpec((n_pad_k, h_pad), lambda i, k: (0, 0)),   # XW (resident)
                pl.BlockSpec((1, h_pad), lambda i, k: (0, 0)),         # bias
                pl.BlockSpec((1, h_pad), lambda i, k: (0, 0)),         # PReLU alpha
            ],
            out_specs=pl.BlockSpec((tm, h_pad), lambda i, k: (i, 0)),
            scratch_shapes=[pltpu.VMEM((tm, h_pad), jnp.float32)],
        ),
        compiler_params=pltpu.CompilerParams(
            dimension_semantics=("parallel", "arbitrary"),
            vmem_limit_bytes=vmem_limit),
    )(adj_p, xw_p, b_p, a_p)

    return out[:N, :h_dim]


sugbcon_forward = jax.jit(_sugbcon_forward_impl)


# ----------------------------- test-only glue --------------------------------

def _ref_normalized_adjacency(edge_index, num_nodes):
    """Unpadded f32 A_hat for the pure-JAX reference."""
    src, dst = edge_index[0], edge_index[1]
    A = jnp.zeros((num_nodes, num_nodes), jnp.float32)
    A = A.at[src, dst].set(1.0)
    A = A.at[dst, src].set(1.0)
    idx = jnp.arange(num_nodes)
    A = A.at[idx, idx].set(1.0)
    deg = A.sum(axis=1)
    d = jnp.where(deg > 0, 1.0 / jnp.sqrt(deg), 0.0)
    return d[:, None] * A * d[None, :]


def _ref_forward(adj_hat, x, W, b, alpha, cast_dtype=None):
    """Pure-JAX reference; optional cast mirrors the kernel's bf16 path
    (bf16 adjacency, bf16-rounded XW)."""
    if cast_dtype is not None:
        adj_hat = adj_hat.astype(cast_dtype).astype(jnp.float32)
        xw = (x.astype(cast_dtype).astype(jnp.float32)
              @ W.astype(cast_dtype).astype(jnp.float32))
        xw = xw.astype(cast_dtype).astype(jnp.float32)
    else:
        xw = x @ W
    h = adj_hat @ xw + b
    return jnp.where(h > 0, h, alpha * h)


def _make_graph(key, n, n_extra):
    ring_src = jnp.arange(n, dtype=jnp.int32)
    ring_dst = (ring_src + 1) % n
    extra = jax.random.randint(key, (2, n_extra), 0, n, dtype=jnp.int32)
    return jnp.concatenate([jnp.stack([ring_src, ring_dst], axis=0), extra],
                           axis=1)


if __name__ == "__main__":
    key = jax.random.PRNGKey(0)
    k_x, k_w, k_e, k_x2, k_e2 = jax.random.split(key, 5)

    # ---- Small demo consistent with the module (single-tile grid) ----
    N = 16            # number of graph nodes
    F_IN = 8          # input feature dim
    HIDDEN = 32       # hidden_channels

    x = jax.random.normal(k_x, (N, F_IN), dtype=jnp.float32)
    edge_index = _make_graph(k_e, N, 8)

    limit = (6.0 / (F_IN + HIDDEN)) ** 0.5
    W = jax.random.uniform(k_w, (F_IN, HIDDEN), jnp.float32, -limit, limit)
    b = jnp.zeros((1, HIDDEN), jnp.float32)
    alpha = jnp.full((1, HIDDEN), 0.25, jnp.float32)      # nn.PReLU default

    hidden = sugbcon_forward(x, edge_index, W, b, alpha)
    hidden = jax.block_until_ready(hidden)
    assert hidden.shape == (N, HIDDEN)

    adj_ref = _ref_normalized_adjacency(edge_index, N)
    # Tight check vs. a reference that mirrors the kernel's bf16 rounding.
    ref_bf16 = _ref_forward(adj_ref, x, W, b, alpha, cast_dtype=jnp.bfloat16)
    assert jnp.allclose(hidden, ref_bf16, atol=2e-3, rtol=2e-3)
    # Loose check vs. the full-precision f32 module semantics.
    ref_f32 = _ref_forward(adj_ref, x, W, b, alpha)
    assert jnp.allclose(hidden, ref_f32, atol=5e-2, rtol=5e-2)

    # ---- Larger graph: exercises multi-tile grid (3x3), padding & accumulator
    N2 = 384
    x2 = jax.random.normal(k_x2, (N2, F_IN), dtype=jnp.float32)
    edge_index2 = _make_graph(k_e2, N2, 256)

    hidden2 = sugbcon_forward(x2, edge_index2, W, b, alpha)
    hidden2 = jax.block_until_ready(hidden2)
    assert hidden2.shape == (N2, HIDDEN)

    adj_ref2 = _ref_normalized_adjacency(edge_index2, N2)
    ref2_bf16 = _ref_forward(adj_ref2, x2, W, b, alpha, cast_dtype=jnp.bfloat16)
    assert jnp.allclose(hidden2, ref2_bf16, atol=2e-3, rtol=2e-3)
    ref2_f32 = _ref_forward(adj_ref2, x2, W, b, alpha)
    assert jnp.allclose(hidden2, ref2_f32, atol=5e-2, rtol=5e-2)

    print("KERNEL_OK")
</pallas_src>

<mosaic_0001>
module attributes {stable_mosaic.version = 11 : i64} {
  func.func @_gcn_prelu_kernel(%arg0: i32, %arg1: i32, %arg2: memref<16x128xbf16, #tpu.memory_space<vmem>>, %arg3: memref<128x128xbf16, #tpu.memory_space<vmem>>, %arg4: memref<1x128xf32, #tpu.memory_space<vmem>>, %arg5: memref<1x128xf32, #tpu.memory_space<vmem>>, %arg6: memref<16x128xf32, #tpu.memory_space<vmem>>, %arg7: memref<16x128xf32, #tpu.memory_space<vmem>>) attributes {dimension_semantics = [#tpu.dimension_semantics<parallel>, #tpu.dimension_semantics<arbitrary>], iteration_bounds = array<i64: 1, 1>, scalar_prefetch = 0 : i64, scratch_operands = 1 : i64, tpu.core_type = #tpu.core_type<tc>, window_params = [{transform_indices = @transform_0, window_bounds = array<i64: 16, 128>}, {pipeline_mode = #tpu.pipeline_mode<synchronous>, transform_indices = @transform_1, window_bounds = array<i64: 128, 128>}, {pipeline_mode = #tpu.pipeline_mode<synchronous>, transform_indices = @transform_2, window_bounds = array<i64: 1, 128>}, {pipeline_mode = #tpu.pipeline_mode<synchronous>, transform_indices = @transform_3, window_bounds = array<i64: 1, 128>}, {transform_indices = @transform_4, window_bounds = array<i64: 16, 128>}]} {
    %c0_i32 = arith.constant 0 : i32
    %0 = arith.cmpi eq, %arg1, %c0_i32 : i32
    %1 = arith.extui %0 : i1 to i32
    %c0_i32_0 = arith.constant 0 : i32
    %2 = arith.cmpi ne, %1, %c0_i32_0 : i32
    scf.if %2 {
      %cst_9 = arith.constant 0.000000e+00 : f32
      %15 = vector.broadcast %cst_9 : f32 to vector<16x128xf32>
      %c0_10 = arith.constant 0 : index
      %c0_11 = arith.constant 0 : index
      %16 = vector.load %arg7[%c0_10, %c0_11] : memref<16x128xf32, #tpu.memory_space<vmem>>, vector<16x128xf32>
      tpu.vector_store %arg7[%c0_10, %c0_11], %15 {strides = array<i32>} : memref<16x128xf32, #tpu.memory_space<vmem>>, vector<16x128xf32>,
    } else {
    }
    %c128_i32 = arith.constant 128 : i32
    %3 = arith.muli %arg1, %c128_i32 : i32
    %4 = tpu.assume_multiple %3, 128 : i32
    %5 = arith.index_cast %4 : i32 to index
    %c0 = arith.constant 0 : index
    %6 = vector.load %arg3[%5, %c0] : memref<128x128xbf16, #tpu.memory_space<vmem>>, vector<128x128xbf16>
    %c0_1 = arith.constant 0 : index
    %c0_2 = arith.constant 0 : index
    %7 = vector.load %arg7[%c0_1, %c0_2] : memref<16x128xf32, #tpu.memory_space<vmem>>, vector<16x128xf32>
    %c0_3 = arith.constant 0 : index
    %c0_4 = arith.constant 0 : index
    %8 = vector.load %arg2[%c0_3, %c0_4] : memref<16x128xbf16, #tpu.memory_space<vmem>>, vector<16x128xbf16>
    %cst = arith.constant dense<0.000000e+00> : vector<16x128xf32>
    %9 = tpu.matmul %8, %6, %cst {dimension_numbers = #tpu.dot_dimension_numbers<[1], [0], [0], [1], [0, 0, 1, 1], [], []>} : vector<16x128xbf16>, vector<128x128xbf16>, vector<16x128xf32> -> vector<16x128xf32>
    %10 = arith.addf %7, %9 : vector<16x128xf32>
    %c0_5 = arith.constant 0 : index
    %c0_6 = arith.constant 0 : index
    %11 = vector.load %arg7[%c0_5, %c0_6] : memref<16x128xf32, #tpu.memory_space<vmem>>, vector<16x128xf32>
    tpu.vector_store %arg7[%c0_5, %c0_6], %10 {strides = array<i32>} : memref<16x128xf32, #tpu.memory_space<vmem>>, vector<16x128xf32>,
    %c0_i32_7 = arith.constant 0 : i32
    %12 = arith.cmpi eq, %arg1, %c0_i32_7 : i32
    %13 = arith.extui %12 : i1 to i32
    %c0_i32_8 = arith.constant 0 : i32
    %14 = arith.cmpi ne, %13, %c0_i32_8 : i32
    scf.if %14 {
      %c0_9 = arith.constant 0 : index
      %c0_10 = arith.constant 0 : index
      %15 = vector.load %arg7[%c0_9, %c0_10] : memref<16x128xf32, #tpu.memory_space<vmem>>, vector<16x128xf32>
      %c0_11 = arith.constant 0 : index
      %c0_12 = arith.constant 0 : index
      %16 = vector.load %arg4[%c0_11, %c0_12] : memref<1x128xf32, #tpu.memory_space<vmem>>, vector<1x128xf32>
      %17 = vector.broadcast %16 : vector<1x128xf32> to vector<16x128xf32>
      %18 = arith.addf %15, %17 : vector<16x128xf32>
      %cst_13 = arith.constant 0.000000e+00 : f32
      %19 = vector.broadcast %cst_13 : f32 to vector<16x128xf32>
      %20 = arith.cmpf ogt, %18, %19 : vector<16x128xf32>
      %c0_14 = arith.constant 0 : index
      %c0_15 = arith.constant 0 : index
      %21 = vector.load %arg5[%c0_14, %c0_15] : memref<1x128xf32, #tpu.memory_space<vmem>>, vector<1x128xf32>
      %22 = vector.broadcast %21 : vector<1x128xf32> to vector<16x128xf32>
      %23 = arith.mulf %22, %18 : vector<16x128xf32>
      %24 = arith.select %20, %18, %23 : vector<16x128xi1>, vector<16x128xf32>
      %c0_16 = arith.constant 0 : index
      %c0_17 = arith.constant 0 : index
      %25 = vector.load %arg6[%c0_16, %c0_17] : memref<16x128xf32, #tpu.memory_space<vmem>>, vector<16x128xf32>
      tpu.vector_store %arg6[%c0_16, %c0_17], %24 {strides = array<i32>} : memref<16x128xf32, #tpu.memory_space<vmem>>, vector<16x128xf32>,
    } else {
    }
    return
  }
  func.func @transform_0(%arg0: i32, %arg1: i32) -> (i32, i32) {
    %c0_i32 = arith.constant 0 : i32
    return %arg0, %arg1 : i32, i32
  }
  func.func @transform_1(%arg0: i32, %arg1: i32) -> (i32, i32) {
    %c0_i32 = arith.constant 0 : i32
    %c0_i32_0 = arith.constant 0 : i32
    %c0_i32_1 = arith.constant 0 : i32
    return %c0_i32, %c0_i32_0 : i32, i32
  }
  func.func @transform_2(%arg0: i32, %arg1: i32) -> (i32, i32) {
    %c0_i32 = arith.constant 0 : i32
    %c0_i32_0 = arith.constant 0 : i32
    %c0_i32_1 = arith.constant 0 : i32
    return %c0_i32, %c0_i32_0 : i32, i32
  }
  func.func @transform_3(%arg0: i32, %arg1: i32) -> (i32, i32) {
    %c0_i32 = arith.constant 0 : i32
    %c0_i32_0 = arith.constant 0 : i32
    %c0_i32_1 = arith.constant 0 : i32
    return %c0_i32, %c0_i32_0 : i32, i32
  }
  func.func @transform_4(%arg0: i32, %arg1: i32) -> (i32, i32) {
    %c0_i32 = arith.constant 0 : i32
    %c0_i32_0 = arith.constant 0 : i32
    return %arg0, %c0_i32 : i32, i32
  }
}

</mosaic_0001>

<bundles_post_ra>
// kernel: _sugbcon_forward_impl.1
= control target key start
LH: loop header
LB: loop body
LE: loop exit
PB: predicated region body
PF: predicated region fallthrough
CT: control target
= control target key end

     0   :  { %v274_v1 = vmov 0.0   ;;  %vm275_vm0 = vmmov 0   ;;  %s349_s0 = inlined_call_operand.vmem [shape: bf16[16,128], index: 0, kind: input, shape index: {}]   ;;  %s350_s1 = inlined_call_operand.vmem [shape: bf16[128,128], index: 1, kind: input, shape index: {}]   ;;  %s351_s2 = inlined_call_operand.vmem [shape: f32[1,128], index: 2, kind: input, shape index: {}]   ;;  %s352_s3 = inlined_call_operand.vmem [shape: f32[1,128], index: 3, kind: input, shape index: {}]   ;;  %s353_s4 = inlined_call_operand.hbm [shape: f32[16,128], index: 4, kind: output, shape index: {}]  }
   0x1   :  { %v241_v0 = vld [vmem:[%s350_s1] sm:$0xff]   ;;  %216 = vmatprep.subr.bf16.mxu0 %v274_v1  ;;  %v242_v2 = vld [vmem:[%s350_s1 + $0x8] sm:$0xff]   ;;  %232 = vmatprep.mubr.msk.bf16.mxu0 %vm275_vm0, %v274_v1  ;;  %v243_v3 = vld [vmem:[%s350_s1 + $0x10] sm:$0xff]  }
   0x2   :  { %217 = vmatpush3.bf16.msra.mxu0 %v241_v0 }
   0x3   :  { %218 = vmatprep.subr.bf16.mxu0 %v274_v1 }
   0x6   :  { %219 = vmatpush3.bf16.msra.mxu0 %v242_v2 }
   0x7   :  { %220 = vmatprep.subr.bf16.mxu0 %v274_v1 }
   0x8   :  { %9 = vsyncpa [#allocation4], 0  ;;  %v244_v4 = vld [vmem:[%s350_s1 + $0x18] sm:$0xff]   ;;  %v245_v5 = vld [vmem:[%s350_s1 + $0x20] sm:$0xff]  }
   0x9   :  { %v246_v6 = vld [vmem:[%s350_s1 + $0x28] sm:$0xff]   ;;  %v247_v7 = vld [vmem:[%s350_s1 + $0x30] sm:$0xff]   ;;  %v248_v8 = vld [vmem:[%s350_s1 + $0x38] sm:$0xff]   ;;  %s276_s1 = smov [#allocation3]  }
   0xa   :  { %221 = vmatpush3.bf16.msra.mxu0 %v243_v3  ;;  %v249_v9 = vld [vmem:[%s349_s0] sm:$0xff]   ;;  %s183_s11 = sshll.u32 %s276_s1, 4  ;;  %s184_s11 = int_to_ptr.vmem [resolvable:$true] %s183_s11 }
   0xb   :  { %222 = vmatprep.subr.bf16.mxu0 %v274_v1  ;;  %v205_v10 = vld [vmem:[%s351_s2] ss:$0 sm:$0xff]  ;;  %s250_s0 = scalar_lea.vmem %s184_s11, 256  ;;  %p255_p1 = scmp.lt.s32.totalorder %s184_s11, %s184_s11 }
   0xc   :  { %v206_v12 = vld [vmem:[%s352_s3] ss:$0 sm:$0xff]  ;;  %p251_p0 = scmp.ne.s32.totalorder %s184_s11, %s250_s0  ;;  %p256_p2 = scmp.lt.s32.totalorder %s250_s0, %s250_s0 }
   0xe   :  { %223 = vmatpush3.bf16.msra.mxu0 %v244_v4  ;;  %p257_p3 = por %p256_p2, %p255_p1 }
   0xf   :  { %224 = vmatprep.subr.bf16.mxu0 %v274_v1 }
  0x10   :  { %p258_p4 = pnand %p257_p3, %p251_p0 }
  0x12   :  { %225 = vmatpush3.bf16.msra.mxu0 %v245_v5 }
  0x13   :  { %226 = vmatprep.subr.bf16.mxu0 %v274_v1 }
  0x16   :  { %227 = vmatpush3.bf16.msra.mxu0 %v246_v6 }
  0x17   :  { %228 = vmatprep.subr.bf16.mxu0 %v274_v1 }
  0x1a   :  { %229 = vmatpush3.bf16.msra.mxu0 %v247_v7 }
  0x1b   :  { %230 = vmatprep.subr.bf16.mxu0 %v274_v1 }
  0x1e   :  { %231 = vmatpush3.bf16.msra.mxu0 %v248_v8 }
  0x21   :  { %233 = vmatmul.mubr.bf16.vlgmr.msra.gmra.mrb[0].mxu0 %v249_v9 }
  0xf4   :  { %v138_v11 = vpop.f32.mrb[0].mxu0 }
  0xf5   :  { %v161_v13 = vadd.f32 %v205_v10, %v138_v11  ;;  %v234_v14 = vpop.f32.mrb[1].mxu0 }
  0xf6   :  { %v141_v15 = vpop.f32.mrb[2].mxu0 }
  0xf7   :  { %vm163_vm1 = vcmp.gt.f32.partialorder %v161_v13, 0.0  ;;  %v172_v16 = vmul.f32 %v206_v12, %v161_v13  ;;  %v162_v17 = vadd.f32 %v205_v10, %v141_v15  ;;  %v235_v18 = vpop.f32.mrb[3].mxu0 }
  0xf9   :  { %v174_v19 = vsel %vm163_vm1, %v161_v13, %v172_v16  ;;  %vm164_vm2 = vcmp.gt.f32.partialorder %v162_v17, 0.0  ;;  %v173_v20 = vmul.f32 %v206_v12, %v162_v17 }
  0xfa   :  { %176 = vst [vmem:[#allocation3] sm:$0xff] %v174_v19 }
  0xfb   :  { %v175_v21 = vsel %vm164_vm2, %v162_v17, %v173_v20 }
  0xfc   :  { %177 = vst [vmem:[#allocation3 + $0x8] sm:$0xff] %v175_v21 }
  0xfd   :  { %261 = shalt.err (!%p258_p4)
}
  0xfe   :  { %s262_s12 = scalar_lea.hbm %s353_s4, 256 }
  0xff   :  { %p263_p5 = scmp.ne.s32.totalorder %s353_s4, %s262_s12  ;;  %p266_p6 = scmp.lt.u32.totalorder %s262_s12, %s353_s4 }
 0x101   :  { %p268_p7 = pnand %p266_p6, %p263_p5 }
 0x103   :  { %271 = shalt.err (!%p268_p7)
}
 0x104   :  { %s277_s17 = smov 128   ;;  %s278_s18 = smov 8  }
 0x105   :  { %189 = dma.vmem_to_hbm [thread:$0]  %s184_s11, 256, %s353_s4, [#allocation4], %s277_s17, %s277_s17, %s278_s18  }
 0x106   :  { %272 = dma.done.wait [#allocation4], 256  }
 0x107   :  { %273 = vsyncadd [#allocation4], 4294967040 }
 0x108   :  { %193 = vsyncpa [#allocation4], 1 }

</bundles_post_ra>
